<compile_context>
chip_gen: v5e
topology: v5e:2x2
jax: 0.10.0
libtpu: 0.0.40
codegen_flags: <defaults>
</compile_context>

<pallas_src>
import functools
import math

import jax
import jax.numpy as jnp
from jax import lax
from jax.experimental import pallas as pl
from jax.experimental.pallas import tpu as pltpu

_LANE = 128


def _fused_mlp_kernel(*refs, n_layers, compute_dtype, transpose_out):
    """refs = (x_ref, w0, b0, w1, b1, ..., w_{L-1}, b_{L-1}, o_ref)."""
    x_ref = refs[0]
    o_ref = refs[-1]

    h = x_ref[...]
    for i in range(n_layers):
        w_ref = refs[1 + 2 * i]
        b_ref = refs[2 + 2 * i]
        last = i == n_layers - 1
        hc = h.astype(compute_dtype)          # any cast happens in-kernel only
        if last and transpose_out:
            # Final layer in (out, batch) orientation: contract the hidden dim
            # of wT (out_f, hid) with the hidden dim of hc (tile_n, hid) ->
            # (out_f, tile_n).  This is the MXU trans_b form (same pattern as
            # q @ k.T); the store below is lane-dense, no output padding.
            y = lax.dot_general(w_ref[...], hc,
                                (((1,), (1,)), ((), ())),
                                preferred_element_type=jnp.float32)
            y = y + b_ref[...]                # (out_f, 1) broadcasts over lanes
        else:
            y = jnp.dot(hc, w_ref[...],
                        preferred_element_type=jnp.float32)
            y = y + b_ref[...]                # (1, out_f) broadcasts over rows
        if not last:
            y = jnp.maximum(y, 0.0)           # ReLU in f32 (v5e-friendly)
        h = y
    o_ref[...] = h.astype(o_ref.dtype)


def _round_up(n, m):
    return ((n + m - 1) // m) * m


def _num_tensorcores():
    """2 on v7x (two TensorCores per chip); 1 on v5e/v6e. Best-effort."""
    try:
        kind = (jax.devices()[0].device_kind or "").lower()
    except Exception:
        return 1
    return 2 if "v7" in kind else 1


def _pick_tile_n(N, in_f, *, num_cores, max_tile=8192,
                 vmem_budget_bytes=8 << 20):
    """Lane-aligned (multiple-of-128) batch tile; the caller pads N up to a
    multiple of it.  Single grid step on 1-TC chips when the batch fits the
    cap; >= num_cores steps on multi-TC chips so every TensorCore gets work."""
    # Bound the tile by a conservative share of scoped VMEM (the
    # double-buffered f32 input stream dominates at small n_hidden).
    vmem_rows = max(_LANE, vmem_budget_bytes // (2 * 4 * max(in_f, 1)))
    cap = min(max_tile, vmem_rows)
    tile = min(cap, _round_up(N, _LANE))
    if num_cores >= 2 and N > _LANE:
        per_core = _round_up(pl.cdiv(N, num_cores), _LANE)
        tile = min(tile, per_core)
    return max(_LANE, (tile // _LANE) * _LANE)


def link_predictor_forward(x, params, *, tile_n=None,
                           compute_dtype=jnp.float32):
    """Fused forward pass of LinkPredictor.

    x: [N, n_hidden] (f32 or bf16; consumed as-is, no wrapper-side cast).
    params: list of (w: [in_f, out_f], b: [out_f]) per layer (weights stored
    pre-transposed relative to torch's [out, in]).
    Returns [N, out_feats] float32.
    """
    N, in_f = x.shape
    n_layers = len(params)
    out_feats = params[-1][0].shape[1]
    transpose_out = out_feats == 1            # lane-dense (1, N) output slab

    if tile_n is None:
        tile_n = _pick_tile_n(N, in_f, num_cores=_num_tensorcores())
    n_pad = _round_up(N, tile_n)
    x_in = x if n_pad == N else jnp.pad(x, ((0, n_pad - N), (0, 0)))

    inputs = [x_in]                           # x is NOT cast in the wrapper
    in_specs = [pl.BlockSpec((tile_n, in_f), lambda i: (i, 0))]

    for li, (w, b) in enumerate(params):
        o_f = w.shape[1]
        if li == n_layers - 1 and transpose_out:
            w_in = w.T.astype(compute_dtype)              # (out_f, hid), tiny
            b_in = b.reshape(o_f, 1).astype(jnp.float32)  # broadcasts on lanes
        else:
            w_in = w.astype(compute_dtype)                # bf16 on fast path
            b_in = b.reshape(1, o_f).astype(jnp.float32)  # bias stays f32
        inputs.append(w_in)
        inputs.append(b_in)
        in_specs.append(pl.BlockSpec(w_in.shape, lambda i: (0, 0)))
        in_specs.append(pl.BlockSpec(b_in.shape, lambda i: (0, 0)))

    if transpose_out:
        out_shape = jax.ShapeDtypeStruct((out_feats, n_pad), jnp.float32)
        out_spec = pl.BlockSpec((out_feats, tile_n), lambda i: (0, i))
    else:
        out_shape = jax.ShapeDtypeStruct((n_pad, out_feats), jnp.float32)
        out_spec = pl.BlockSpec((tile_n, out_feats), lambda i: (i, 0))

    kernel = functools.partial(_fused_mlp_kernel,
                               n_layers=n_layers,
                               compute_dtype=compute_dtype,
                               transpose_out=transpose_out)

    out = pl.pallas_call(
        kernel,
        out_shape=out_shape,
        grid_spec=pltpu.PrefetchScalarGridSpec(
            num_scalar_prefetch=0,
            grid=(n_pad // tile_n,),
            in_specs=in_specs,
            out_specs=out_spec,
        ),
        compiler_params=pltpu.CompilerParams(
            dimension_semantics=("parallel",),
        ),
    )(*inputs)

    if transpose_out:
        if n_pad != N:
            out = out[:, :N]
        return out.reshape(N, out_feats)      # (1, N) -> (N, 1): metadata-only
    if n_pad != N:
        out = out[:N]
    return out


def init_link_predictor_params(key, n_hidden, out_feats, n_layers):
    """Deterministic init matching reset_parameters():
       xavier_normal_ on weights, zeros on biases."""
    params = []
    for i in range(n_layers):
        in_f = n_hidden   # module always uses n_hidden as the layer input dim
        out_f = out_feats if i == n_layers - 1 else n_hidden
        key, sub = jax.random.split(key)
        std = math.sqrt(2.0 / (in_f + out_f))
        # stored as [in_f, out_f] (transposed relative to torch's [out, in])
        w = std * jax.random.normal(sub, (in_f, out_f), dtype=jnp.float32)
        b = jnp.zeros((out_f,), dtype=jnp.float32)
        params.append((w, b))
    return params


if __name__ == "__main__":
    # Module-consistent small shapes: N node-pair features of width n_hidden,
    # out_feats=1 (link score), n_layers=3.
    N = 256
    n_hidden = 32
    out_feats = 1
    n_layers = 3

    key = jax.random.PRNGKey(0)
    key_x, key_p = jax.random.split(key)

    x = jax.random.normal(key_x, (N, n_hidden), dtype=jnp.float32)
    params = init_link_predictor_params(key_p, n_hidden, out_feats, n_layers)

    def reference(xv, ps):
        h = xv
        for i, (w, b) in enumerate(ps):
            h = h @ w + b
            if i < len(ps) - 1:
                h = jnp.maximum(h, 0.0)
        return h

    ref = reference(x, params)

    # f32 path (exact check); out_feats=1 -> lane-dense transposed output.
    out_f32 = jax.block_until_ready(
        link_predictor_forward(x, params, compute_dtype=jnp.float32))
    assert out_f32.shape == (N, out_feats)
    assert jnp.allclose(out_f32, ref, atol=1e-5, rtol=1e-5)

    # bf16 MXU fast path: caller supplies bf16 x and the kernel consumes it
    # directly (no wrapper-side cast); accumulate/bias/ReLU stay f32.
    x_bf16 = x.astype(jnp.bfloat16)
    out_bf16 = jax.block_until_ready(
        link_predictor_forward(x_bf16, params, compute_dtype=jnp.bfloat16))
    assert out_bf16.shape == (N, out_feats)
    assert jnp.allclose(out_bf16, ref, atol=1e-1, rtol=1e-1)

    # Ragged batch (N not a multiple of the tile): wrapper zero-pads rows and
    # slices them back -- no single-full-array fallback block.
    x_rag = x[:200]
    out_rag = jax.block_until_ready(
        link_predictor_forward(x_rag, params, compute_dtype=jnp.float32))
    assert out_rag.shape == (200, out_feats)
    assert jnp.allclose(out_rag, ref[:200], atol=1e-5, rtol=1e-5)

    # out_feats > 1 exercises the non-transposed (tile_n, out_feats) output
    # path (no padding, no post-slice).
    params8 = init_link_predictor_params(key_p, n_hidden, 8, n_layers)
    ref8 = reference(x, params8)
    out8 = jax.block_until_ready(
        link_predictor_forward(x, params8, compute_dtype=jnp.float32))
    assert out8.shape == (N, 8)
    assert jnp.allclose(out8, ref8, atol=1e-5, rtol=1e-5)

    # TODO(synk): BatchNorm1d (bn=True) and dropout are not exercised by this
    # forward (bn defaults to False; dropout is never applied in forward()).

    print("KERNEL_OK")
</pallas_src>

<mosaic_0001>
module attributes {stable_mosaic.version = 11 : i64} {
  func.func @_fused_mlp_kernel(%arg0: i32, %arg1: memref<256x32xf32, #tpu.memory_space<vmem>>, %arg2: memref<32x32xf32, #tpu.memory_space<vmem>>, %arg3: memref<1x32xf32, #tpu.memory_space<vmem>>, %arg4: memref<32x32xf32, #tpu.memory_space<vmem>>, %arg5: memref<1x32xf32, #tpu.memory_space<vmem>>, %arg6: memref<1x32xf32, #tpu.memory_space<vmem>>, %arg7: memref<1x1xf32, #tpu.memory_space<vmem>>, %arg8: memref<1x256xf32, #tpu.memory_space<vmem>>) attributes {dimension_semantics = [#tpu.dimension_semantics<parallel>], iteration_bounds = array<i64: 1>, scalar_prefetch = 0 : i64, scratch_operands = 0 : i64, tpu.core_type = #tpu.core_type<tc>, window_params = [{transform_indices = @transform_0, window_bounds = array<i64: 256, 32>}, {pipeline_mode = #tpu.pipeline_mode<synchronous>, transform_indices = @transform_1, window_bounds = array<i64: 32, 32>}, {pipeline_mode = #tpu.pipeline_mode<synchronous>, transform_indices = @transform_2, window_bounds = array<i64: 1, 32>}, {pipeline_mode = #tpu.pipeline_mode<synchronous>, transform_indices = @transform_3, window_bounds = array<i64: 32, 32>}, {pipeline_mode = #tpu.pipeline_mode<synchronous>, transform_indices = @transform_4, window_bounds = array<i64: 1, 32>}, {pipeline_mode = #tpu.pipeline_mode<synchronous>, transform_indices = @transform_5, window_bounds = array<i64: 1, 32>}, {pipeline_mode = #tpu.pipeline_mode<synchronous>, transform_indices = @transform_6, window_bounds = array<i64: 1, 1>}, {transform_indices = @transform_7, window_bounds = array<i64: 1, 256>}]} {
    %c0 = arith.constant 0 : index
    %c0_0 = arith.constant 0 : index
    %0 = vector.load %arg1[%c0, %c0_0] : memref<256x32xf32, #tpu.memory_space<vmem>>, vector<256x32xf32>
    %c0_1 = arith.constant 0 : index
    %c0_2 = arith.constant 0 : index
    %1 = vector.load %arg2[%c0_1, %c0_2] : memref<32x32xf32, #tpu.memory_space<vmem>>, vector<32x32xf32>
    %cst = arith.constant dense<0.000000e+00> : vector<256x32xf32>
    %2 = tpu.matmul %0, %1, %cst {dimension_numbers = #tpu.dot_dimension_numbers<[1], [0], [0], [1], [0, 0, 1, 1], [], []>} : vector<256x32xf32>, vector<32x32xf32>, vector<256x32xf32> -> vector<256x32xf32>
    %c0_3 = arith.constant 0 : index
    %c0_4 = arith.constant 0 : index
    %3 = vector.load %arg3[%c0_3, %c0_4] : memref<1x32xf32, #tpu.memory_space<vmem>>, vector<1x32xf32>
    %4 = vector.broadcast %3 : vector<1x32xf32> to vector<256x32xf32>
    %5 = arith.addf %2, %4 : vector<256x32xf32>
    %cst_5 = arith.constant 0.000000e+00 : f32
    %6 = vector.broadcast %cst_5 : f32 to vector<256x32xf32>
    %7 = arith.maximumf %5, %6 : vector<256x32xf32>
    %c0_6 = arith.constant 0 : index
    %c0_7 = arith.constant 0 : index
    %8 = vector.load %arg4[%c0_6, %c0_7] : memref<32x32xf32, #tpu.memory_space<vmem>>, vector<32x32xf32>
    %cst_8 = arith.constant dense<0.000000e+00> : vector<256x32xf32>
    %9 = tpu.matmul %7, %8, %cst_8 {dimension_numbers = #tpu.dot_dimension_numbers<[1], [0], [0], [1], [0, 0, 1, 1], [], []>} : vector<256x32xf32>, vector<32x32xf32>, vector<256x32xf32> -> vector<256x32xf32>
    %c0_9 = arith.constant 0 : index
    %c0_10 = arith.constant 0 : index
    %10 = vector.load %arg5[%c0_9, %c0_10] : memref<1x32xf32, #tpu.memory_space<vmem>>, vector<1x32xf32>
    %11 = vector.broadcast %10 : vector<1x32xf32> to vector<256x32xf32>
    %12 = arith.addf %9, %11 : vector<256x32xf32>
    %cst_11 = arith.constant 0.000000e+00 : f32
    %13 = vector.broadcast %cst_11 : f32 to vector<256x32xf32>
    %14 = arith.maximumf %12, %13 : vector<256x32xf32>
    %c0_12 = arith.constant 0 : index
    %c0_13 = arith.constant 0 : index
    %15 = vector.load %arg6[%c0_12, %c0_13] : memref<1x32xf32, #tpu.memory_space<vmem>>, vector<1x32xf32>
    %cst_14 = arith.constant dense<0.000000e+00> : vector<1x256xf32>
    %16 = tpu.matmul %15, %14, %cst_14 {dimension_numbers = #tpu.dot_dimension_numbers<[1], [1], [0], [0], [0, 0, 1, 0], [], []>} : vector<1x32xf32>, vector<256x32xf32>, vector<1x256xf32> -> vector<1x256xf32>
    %c0_15 = arith.constant 0 : index
    %c0_16 = arith.constant 0 : index
    %17 = vector.load %arg7[%c0_15, %c0_16] : memref<1x1xf32, #tpu.memory_space<vmem>>, vector<1x1xf32>
    %18 = vector.broadcast %17 : vector<1x1xf32> to vector<1x256xf32>
    %19 = arith.addf %16, %18 : vector<1x256xf32>
    %c0_17 = arith.constant 0 : index
    %c0_18 = arith.constant 0 : index
    %20 = vector.load %arg8[%c0_17, %c0_18] : memref<1x256xf32, #tpu.memory_space<vmem>>, vector<1x256xf32>
    tpu.vector_store %arg8[%c0_17, %c0_18], %19 {strides = array<i32>} : memref<1x256xf32, #tpu.memory_space<vmem>>, vector<1x256xf32>,
    return
  }
  func.func @transform_0(%arg0: i32) -> (i32, i32) {
    %c0_i32 = arith.constant 0 : i32
    %c0_i32_0 = arith.constant 0 : i32
    return %arg0, %c0_i32 : i32, i32
  }
  func.func @transform_1(%arg0: i32) -> (i32, i32) {
    %c0_i32 = arith.constant 0 : i32
    %c0_i32_0 = arith.constant 0 : i32
    %c0_i32_1 = arith.constant 0 : i32
    return %c0_i32, %c0_i32_0 : i32, i32
  }
  func.func @transform_2(%arg0: i32) -> (i32, i32) {
    %c0_i32 = arith.constant 0 : i32
    %c0_i32_0 = arith.constant 0 : i32
    %c0_i32_1 = arith.constant 0 : i32
    return %c0_i32, %c0_i32_0 : i32, i32
  }
  func.func @transform_3(%arg0: i32) -> (i32, i32) {
    %c0_i32 = arith.constant 0 : i32
    %c0_i32_0 = arith.constant 0 : i32
    %c0_i32_1 = arith.constant 0 : i32
    return %c0_i32, %c0_i32_0 : i32, i32
  }
  func.func @transform_4(%arg0: i32) -> (i32, i32) {
    %c0_i32 = arith.constant 0 : i32
    %c0_i32_0 = arith.constant 0 : i32
    %c0_i32_1 = arith.constant 0 : i32
    return %c0_i32, %c0_i32_0 : i32, i32
  }
  func.func @transform_5(%arg0: i32) -> (i32, i32) {
    %c0_i32 = arith.constant 0 : i32
    %c0_i32_0 = arith.constant 0 : i32
    %c0_i32_1 = arith.constant 0 : i32
    return %c0_i32, %c0_i32_0 : i32, i32
  }
  func.func @transform_6(%arg0: i32) -> (i32, i32) {
    %c0_i32 = arith.constant 0 : i32
    %c0_i32_0 = arith.constant 0 : i32
    %c0_i32_1 = arith.constant 0 : i32
    return %c0_i32, %c0_i32_0 : i32, i32
  }
  func.func @transform_7(%arg0: i32) -> (i32, i32) {
    %c0_i32 = arith.constant 0 : i32
    %c0_i32_0 = arith.constant 0 : i32
    return %c0_i32, %arg0 : i32, i32
  }
}

</mosaic_0001>

<bundles_post_ra>
// kernel: tpu_custom_call.1
= control target key start
LH: loop header
LB: loop body
LE: loop exit
PB: predicated region body
PF: predicated region fallthrough
CT: control target
= control target key end

     0   :  { %s1250_s0 = inlined_call_operand.vmem [shape: f32[256,32], index: 0, kind: input, shape index: {}]   ;;  %s1251_s1 = inlined_call_operand.vmem [shape: f32[32,32], index: 1, kind: input, shape index: {}]   ;;  %s1252_s2 = inlined_call_operand.vmem [shape: f32[1,32], index: 2, kind: input, shape index: {}]   ;;  %s1253_s3 = inlined_call_operand.vmem [shape: f32[32,32], index: 3, kind: input, shape index: {}]   ;;  %s1254_s4 = inlined_call_operand.vmem [shape: f32[1,32], index: 4, kind: input, shape index: {}]   ;;  %s1255_s5 = inlined_call_operand.vmem [shape: f32[1,32], index: 5, kind: input, shape index: {}]   ;;  %s1256_s6 = inlined_call_operand.<no memory space> [shape: f32[1,1], index: 6, kind: input, shape index: {}]   ;;  %s1257_s7 = inlined_call_operand.hbm [shape: f32[1,256], index: 7, kind: output, shape index: {}]  }
   0x1   :  { %v12_v0 = vstv %s1256_s6 }
   0x2   :  { %13 = vst [vmem:[#allocation2] sm:$0x1] %v12_v0 }
   0x3   :  { %v64_v1 = vld [vmem:[%s1251_s1 + $0x18] sm:$0xff]  ;;  %v63_v2 = vld [vmem:[%s1251_s1 + $0x10] sm:$0xff]  ;;  %v62_v3 = vld [vmem:[%s1251_s1 + $0x8] sm:$0xff] }
   0x4   :  { %178 = vmatpush.msra.mxu0 %v64_v1  ;;  %832 = vmatpush.msra.mxu2 %v64_v1 }
   0x6   :  { %179 = vmatpush.msra.mxu0 %v63_v2  ;;  %833 = vmatpush.msra.mxu2 %v63_v2 }
   0x7   :  { %14 = vsyncpa [#allocation4], 0  ;;  %v61_v4 = vld [vmem:[%s1251_s1] sm:$0xff]  ;;  %vm69_vm0 = vcmask 261120   ;;  %v30_v6 = vld [vmem:[%s1250_s0 + $0x8] sm:$0xff]  ;;  %s725_s10 = sshll.u32 %s1257_s7, 4  ;;  %s726_s10 = int_to_ptr.hbm [resolvable:$true] %s725_s10 }
   0x8   :  { %180 = vmatpush.msra.mxu0 %v62_v3  ;;  %v29_v5 = vld [vmem:[%s1250_s0] sm:$0xff]  ;;  %834 = vmatpush.msra.mxu2 %v62_v3  ;;  %v31_v7 = vld [vmem:[%s1250_s0 + $0x10] sm:$0xff]  ;;  %v32_v8 = vld [vmem:[%s1250_s0 + $0x18] sm:$0xff]  ;;  %vm710_vm1 = vcmask 1040384  }
   0x9   :  { %v33_v9 = vld [vmem:[%s1250_s0 + $0x20] sm:$0xff]  ;;  %v34_v10 = vld [vmem:[%s1250_s0 + $0x28] sm:$0xff]  ;;  %v35_v11 = vld [vmem:[%s1250_s0 + $0x30] sm:$0xff] }
   0xa   :  { %181 = vmatpush.msra.mxu0 %v61_v4  ;;  %835 = vmatpush.msra.mxu2 %v61_v4  ;;  %v36_v12 = vld [vmem:[%s1250_s0 + $0x38] sm:$0xff]  ;;  %v37_v13 = vld [vmem:[%s1250_s0 + $0x40] sm:$0xff]  ;;  %v38_v14 = vld [vmem:[%s1250_s0 + $0x48] sm:$0xff] }
   0xb   :  { %734 = vmatmul.msk.f32.vlgmr.msra.gmra.mxu0 %vm69_vm0, %v29_v5  ;;  %v39_v15 = vld [vmem:[%s1250_s0 + $0x50] sm:$0xff]  ;;  %v40_v16 = vld [vmem:[%s1250_s0 + $0x58] sm:$0xff]  ;;  %v41_v19 = vld [vmem:[%s1250_s0 + $0x60] sm:$0xff] }
   0xc   :  { %v314_v17 = vld [vmem:[%s1253_s3 + $0x18] sm:$0xff]  ;;  %v313_v18 = vld [vmem:[%s1253_s3 + $0x10] sm:$0xff]  ;;  %v312_v20 = vld [vmem:[%s1253_s3 + $0x8] sm:$0xff] }
   0xd   :  { %427 = vmatpush.msra.mxu1 %v314_v17  ;;  %836 = vmatpush.msra.mxu3 %v314_v17  ;;  %v311_v21 = vld [vmem:[%s1253_s3] sm:$0xff]  ;;  %v42_v22 = vld [vmem:[%s1250_s0 + $0x68] sm:$0xff]  ;;  %v43_v23 = vld [vmem:[%s1250_s0 + $0x70] sm:$0xff] }
   0xe   :  { %v48_v24 = vld [vmem:[%s1250_s0 + $0x98] sm:$0xff]  ;;  %v49_v26 = vld [vmem:[%s1250_s0 + $0xa0] sm:$0xff]  ;;  %v50_v32 = vld [vmem:[%s1250_s0 + $0xa8] sm:$0xff] }
   0xf   :  { %428 = vmatpush.msra.mxu1 %v313_v18  ;;  %837 = vmatpush.msra.mxu3 %v313_v18  ;;  %v44_v25 = vld [vmem:[%s1250_s0 + $0x78] sm:$0xff]  ;;  %v1015_v27 = vld [vmem:[%s1252_s2] ss:$0 sm:$0xff]  ;;  %v46_v34 = vld [vmem:[%s1250_s0 + $0x88] sm:$0xff] }
  0x10   :  { %753 = vmatmul.msk.f32.vlgmr.msra.gmra.mxu2 %vm69_vm0, %v48_v24  ;;  %v45_v29 = vld [vmem:[%s1250_s0 + $0x80] sm:$0xff]  ;;  %v51_v37 = vld [vmem:[%s1250_s0 + $0xb0] sm:$0xff]  ;;  %v52_v42 = vld [vmem:[%s1250_s0 + $0xb8] sm:$0xff] }
  0x11   :  { %429 = vmatpush.msra.mxu1 %v312_v20  ;;  %838 = vmatpush.msra.mxu3 %v312_v20  ;;  %v47_v39 = vld [vmem:[%s1250_s0 + $0x90] sm:$0xff]  ;;  %v53_v46 = vld [vmem:[%s1250_s0 + $0xc0] sm:$0xff]  ;;  %v54_v50 = vld [vmem:[%s1250_s0 + $0xc8] sm:$0xff] }
  0x12   :  { %v55_v54 = vld [vmem:[%s1250_s0 + $0xd0] sm:$0xff]  ;;  %v56_v58 = vld [vmem:[%s1250_s0 + $0xd8] sm:$0xff]  ;;  %v57_v62 = vld [vmem:[%s1250_s0 + $0xe0] sm:$0xff] }
  0x13   :  { %735 = vmatmul.msk.f32.gmra.mxu0 %vm69_vm0, %v30_v6  ;;  %430 = vmatpush.msra.mxu1 %v311_v21  ;;  %v58_v2 = vld [vmem:[%s1250_s0 + $0xe8] sm:$0xff]  ;;  %v59_v6 = vld [vmem:[%s1250_s0 + $0xf0] sm:$0xff] }
  0x14   :  { %839 = vmatpush.msra.mxu3 %v311_v21 }
  0x18   :  { %754 = vmatmul.msk.f32.gmra.mxu2 %vm69_vm0, %v49_v26 }
  0x1b   :  { %736 = vmatmul.msk.f32.gmra.mxu0 %vm69_vm0, %v31_v7 }
  0x20   :  { %755 = vmatmul.msk.f32.gmra.mxu2 %vm69_vm0, %v50_v32 }
  0x23   :  { %737 = vmatmul.msk.f32.gmra.mxu0 %vm69_vm0, %v32_v8 }
  0x28   :  { %756 = vmatmul.msk.f32.gmra.mxu2 %vm69_vm0, %v51_v37 }
  0x2b   :  { %738 = vmatmul.msk.f32.gmra.mxu0 %vm69_vm0, %v33_v9 }
  0x30   :  { %757 = vmatmul.msk.f32.gmra.mxu2 %vm69_vm0, %v52_v42 }
  0x33   :  { %739 = vmatmul.msk.f32.gmra.mxu0 %vm69_vm0, %v34_v10  ;;  %v60_v10 = vld [vmem:[%s1250_s0 + $0xf8] sm:$0xff] }
  0x38   :  { %758 = vmatmul.msk.f32.gmra.mxu2 %vm69_vm0, %v53_v46 }
  0x3b   :  { %740 = vmatmul.msk.f32.gmra.mxu0 %vm69_vm0, %v35_v11 }
  0x40   :  { %759 = vmatmul.msk.f32.gmra.mxu2 %vm69_vm0, %v54_v50 }
  0x43   :  { %741 = vmatmul.msk.f32.gmra.mxu0 %vm69_vm0, %v36_v12 }
  0x48   :  { %760 = vmatmul.msk.f32.gmra.mxu2 %vm69_vm0, %v55_v54 }
  0x4b   :  { %742 = vmatmul.msk.f32.gmra.mxu0 %vm69_vm0, %v37_v13 }
  0x50   :  { %761 = vmatmul.msk.f32.gmra.mxu2 %vm69_vm0, %v56_v58 }
  0x53   :  { %743 = vmatmul.msk.f32.gmra.mxu0 %vm69_vm0, %v38_v14 }
  0x58   :  { %762 = vmatmul.msk.f32.gmra.mxu2 %vm69_vm0, %v57_v62 }
  0x5b   :  { %744 = vmatmul.msk.f32.gmra.mxu0 %vm69_vm0, %v39_v15 }
  0x60   :  { %763 = vmatmul.msk.f32.gmra.mxu2 %vm69_vm0, %v58_v2 }
  0x63   :  { %745 = vmatmul.msk.f32.gmra.mxu0 %vm69_vm0, %v40_v16 }
  0x68   :  { %764 = vmatmul.msk.f32.gmra.mxu2 %vm69_vm0, %v59_v6 }
  0x6b   :  { %746 = vmatmul.msk.f32.gmra.mxu0 %vm69_vm0, %v41_v19 }
  0x70   :  { %765 = vmatmul.msk.f32.gmra.mxu2 %vm69_vm0, %v60_v10 }
  0x73   :  { %747 = vmatmul.msk.f32.gmra.mxu0 %vm69_vm0, %v42_v22 }
  0x7b   :  { %748 = vmatmul.msk.f32.gmra.mxu0 %vm69_vm0, %v43_v23 }
  0x83   :  { %749 = vmatmul.msk.f32.gmra.mxu0 %vm69_vm0, %v44_v25 }
  0x88   :  { %v183_v28 = vpop.f32.mrf.mxu0 }
  0x89   :  { %v184_v30 = vadd.f32 %v1015_v27, %v183_v28 }
  0x8b   :  { %v279_v31 = vmax.f32 %v184_v30, 0.0  ;;  %750 = vmatmul.msk.f32.gmra.mxu0 %vm69_vm0, %v45_v29 }
  0x8d   :  { %766 = vmatmul.msk.f32.vlgmr.msra.gmra.mxu1 %vm69_vm0, %v279_v31 }
  0x90   :  { %v186_v33 = vpop.f32.mrf.mxu0 }
  0x91   :  { %v187_v35 = vadd.f32 %v1015_v27, %v186_v33 }
  0x93   :  { %v280_v36 = vmax.f32 %v187_v35, 0.0  ;;  %751 = vmatmul.msk.f32.gmra.mxu0 %vm69_vm0, %v46_v34  ;;  %v240_v25 = vpop.f32.mrf.mxu2 }
  0x94   :  { %v241_v42 = vadd.f32 %v1015_v27, %v240_v25  ;;  %v1155_v25 = vld [vmem:[%s1254_s4] ss:$0 sm:$0xff] }
  0x95   :  { %767 = vmatmul.msk.f32.gmra.mxu1 %vm69_vm0, %v280_v36 }
  0x98   :  { %v189_v38 = vpop.f32.mrf.mxu0 }
  0x99   :  { %v190_v40 = vadd.f32 %v1015_v27, %v189_v38 }
  0x9b   :  { %v281_v41 = vmax.f32 %v190_v40, 0.0  ;;  %752 = vmatmul.msk.f32.gmra.mxu0 %vm69_vm0, %v47_v39  ;;  %v243_v32 = vpop.f32.mrf.mxu2 }
  0x9c   :  { %v244_v46 = vadd.f32 %v1015_v27, %v243_v32 }
  0x9d   :  { %768 = vmatmul.msk.f32.gmra.mxu1 %vm69_vm0, %v281_v41 }
  0xa0   :  { %v192_v43 = vpop.f32.mrf.mxu0 }
  0xa1   :  { %v193_v44 = vadd.f32 %v1015_v27, %v192_v43 }
  0xa3   :  { %v282_v45 = vmax.f32 %v193_v44, 0.0  ;;  %v246_v37 = vpop.f32.mrf.mxu2  ;;  %v298_v44 = vmax.f32 %v241_v42, 0.0 }
  0xa4   :  { %v247_v50 = vadd.f32 %v1015_v27, %v246_v37 }
  0xa5   :  { %769 = vmatmul.msk.f32.gmra.mxu1 %vm69_vm0, %v282_v45 }
  0xa8   :  { %v195_v47 = vpop.f32.mrf.mxu0 }
  0xa9   :  { %v196_v48 = vadd.f32 %v1015_v27, %v195_v47  ;;  %v299_v47 = vmax.f32 %v244_v46, 0.0 }
  0xab   :  { %v283_v49 = vmax.f32 %v196_v48, 0.0  ;;  %v249_v43 = vpop.f32.mrf.mxu2 }
  0xac   :  { %v250_v54 = vadd.f32 %v1015_v27, %v249_v43 }
  0xad   :  { %770 = vmatmul.msk.f32.gmra.mxu1 %vm69_vm0, %v283_v49 }
  0xb0   :  { %v198_v51 = vpop.f32.mrf.mxu0 }
  0xb1   :  { %v199_v52 = vadd.f32 %v1015_v27, %v198_v51  ;;  %v300_v51 = vmax.f32 %v247_v50, 0.0 }
  0xb3   :  { %v284_v53 = vmax.f32 %v199_v52, 0.0  ;;  %v252_v49 = vpop.f32.mrf.mxu2 }
  0xb5   :  { %771 = vmatmul.msk.f32.gmra.mxu1 %vm69_vm0, %v284_v53 }
  0xb8   :  { %v201_v55 = vpop.f32.mrf.mxu0 }
  0xb9   :  { %v202_v56 = vadd.f32 %v1015_v27, %v201_v55  ;;  %v301_v55 = vmax.f32 %v250_v54, 0.0 }
  0xbb   :  { %v285_v57 = vmax.f32 %v202_v56, 0.0  ;;  %v255_v53 = vpop.f32.mrf.mxu2 }
  0xbd   :  { %772 = vmatmul.msk.f32.gmra.mxu1 %vm69_vm0, %v285_v57  ;;  %v253_v57 = vadd.f32 %v1015_v27, %v252_v49 }
  0xc0   :  { %v204_v59 = vpop.f32.mrf.mxu0 }
  0xc1   :  { %v205_v60 = vadd.f32 %v1015_v27, %v204_v59  ;;  %v302_v59 = vmax.f32 %v253_v57, 0.0 }
  0xc3   :  { %v286_v61 = vmax.f32 %v205_v60, 0.0  ;;  %v258_v58 = vpop.f32.mrf.mxu2 }
  0xc5   :  { %773 = vmatmul.msk.f32.gmra.mxu1 %vm69_vm0, %v286_v61  ;;  %v256_v61 = vadd.f32 %v1015_v27, %v255_v53 }
  0xc8   :  { %v207_v63 = vpop.f32.mrf.mxu0 }
  0xc9   :  { %v208_v0 = vadd.f32 %v1015_v27, %v207_v63  ;;  %v303_v63 = vmax.f32 %v256_v61, 0.0 }
  0xcb   :  { %v287_v1 = vmax.f32 %v208_v0, 0.0  ;;  %v261_v62 = vpop.f32.mrf.mxu2 }
  0xcd   :  { %774 = vmatmul.msk.f32.gmra.mxu1 %vm69_vm0, %v287_v1  ;;  %v259_v1 = vadd.f32 %v1015_v27, %v258_v58 }
  0xcf   :  { %v304_v2 = vmax.f32 %v259_v1, 0.0 }
  0xd0   :  { %v210_v3 = vpop.f32.mrf.mxu0 }
  0xd1   :  { %v211_v4 = vadd.f32 %v1015_v27, %v210_v3 }
  0xd3   :  { %v288_v5 = vmax.f32 %v211_v4, 0.0  ;;  %v264_v4 = vpop.f32.mrf.mxu2 }
  0xd5   :  { %775 = vmatmul.msk.f32.gmra.mxu1 %vm69_vm0, %v288_v5  ;;  %v262_v5 = vadd.f32 %v1015_v27, %v261_v62 }
  0xd7   :  { %v305_v6 = vmax.f32 %v262_v5, 0.0 }
  0xd8   :  { %v213_v7 = vpop.f32.mrf.mxu0 }
  0xd9   :  { %v214_v8 = vadd.f32 %v1015_v27, %v213_v7 }
  0xdb   :  { %v289_v9 = vmax.f32 %v214_v8, 0.0  ;;  %v267_v8 = vpop.f32.mrf.mxu2 }
  0xdd   :  { %776 = vmatmul.msk.f32.gmra.mxu1 %vm69_vm0, %v289_v9  ;;  %v265_v9 = vadd.f32 %v1015_v27, %v264_v4 }
  0xdf   :  { %v306_v10 = vmax.f32 %v265_v9, 0.0 }
  0xe0   :  { %v216_v11 = vpop.f32.mrf.mxu0 }
  0xe1   :  { %v217_v12 = vadd.f32 %v1015_v27, %v216_v11 }
  0xe3   :  { %v290_v13 = vmax.f32 %v217_v12, 0.0  ;;  %v268_v12 = vadd.f32 %v1015_v27, %v267_v8 }
  0xe5   :  { %777 = vmatmul.msk.f32.gmra.mxu1 %vm69_vm0, %v290_v13  ;;  %v270_v13 = vpop.f32.mrf.mxu2 }
  0xe8   :  { %v219_v14 = vpop.f32.mrf.mxu0 }
  0xe9   :  { %v220_v15 = vadd.f32 %v1015_v27, %v219_v14  ;;  %v307_v14 = vmax.f32 %v268_v12, 0.0 }
  0xeb   :  { %v291_v16 = vmax.f32 %v220_v15, 0.0 }
  0xed   :  { %778 = vmatmul.msk.f32.gmra.mxu1 %vm69_vm0, %v291_v16  ;;  %v271_v16 = vadd.f32 %v1015_v27, %v270_v13 }
  0xf0   :  { %v222_v17 = vpop.f32.mrf.mxu0 }
  0xf1   :  { %v223_v18 = vadd.f32 %v1015_v27, %v222_v17  ;;  %v273_v17 = vpop.f32.mrf.mxu2 }
  0xf3   :  { %v292_v19 = vmax.f32 %v223_v18, 0.0  ;;  %v308_v18 = vmax.f32 %v271_v16, 0.0 }
  0xf5   :  { %779 = vmatmul.msk.f32.gmra.mxu1 %vm69_vm0, %v292_v19 }
  0xf8   :  { %v225_v20 = vpop.f32.mrf.mxu0 }
  0xf9   :  { %v226_v21 = vadd.f32 %v1015_v27, %v225_v20  ;;  %v274_v20 = vadd.f32 %v1015_v27, %v273_v17 }
  0xfb   :  { %v293_v22 = vmax.f32 %v226_v21, 0.0  ;;  %v309_v21 = vmax.f32 %v274_v20, 0.0 }
  0xfd   :  { %780 = vmatmul.msk.f32.gmra.mxu1 %vm69_vm0, %v293_v22 }
 0x100   :  { %v228_v23 = vpop.f32.mrf.mxu0 }
 0x101   :  { %v229_v24 = vadd.f32 %v1015_v27, %v228_v23  ;;  %v276_v23 = vpop.f32.mrf.mxu2 }
 0x103   :  { %v294_v26 = vmax.f32 %v229_v24, 0.0  ;;  %v277_v24 = vadd.f32 %v1015_v27, %v276_v23 }
 0x105   :  { %781 = vmatmul.msk.f32.gmra.mxu1 %vm69_vm0, %v294_v26  ;;  %v310_v26 = vmax.f32 %v277_v24, 0.0 }
 0x108   :  { %v231_v28 = vpop.f32.mrf.mxu0 }
 0x109   :  { %v232_v29 = vadd.f32 %v1015_v27, %v231_v28 }
 0x10a   :  { %v1106_v30 = vpop.f32.mrf.mxu1 }
 0x10b   :  { %v295_v31 = vmax.f32 %v232_v29, 0.0 }
 0x10d   :  { %782 = vmatmul.msk.f32.gmra.mxu1 %vm69_vm0, %v295_v31 }
 0x110   :  { %v234_v33 = vpop.f32.mrf.mxu0 }
 0x111   :  { %v235_v34 = vadd.f32 %v1015_v27, %v234_v33 }
 0x112   :  { %v1110_v35 = vpop.f32.mrf.mxu1 }
 0x113   :  { %v296_v36 = vmax.f32 %v235_v34, 0.0 }
 0x115   :  { %783 = vmatmul.msk.f32.vlgmr.msra.gmra.mxu3 %vm69_vm0, %v296_v36 }
 0x118   :  { %v237_v38 = vpop.f32.mrf.mxu0 }
 0x119   :  { %v238_v39 = vadd.f32 %v1015_v27, %v237_v38 }
 0x11a   :  { %v1114_v40 = vpop.f32.mrf.mxu1 }
 0x11b   :  { %v297_v41 = vmax.f32 %v238_v39, 0.0 }
 0x11d   :  { %784 = vmatmul.msk.f32.gmra.mxu3 %vm69_vm0, %v297_v41 }
 0x122   :  { %v1118_v45 = vpop.f32.mrf.mxu1 }
 0x125   :  { %785 = vmatmul.msk.f32.gmra.mxu3 %vm69_vm0, %v298_v44 }
 0x12a   :  { %v1122_v48 = vpop.f32.mrf.mxu1 }
 0x12d   :  { %786 = vmatmul.msk.f32.gmra.mxu3 %vm69_vm0, %v299_v47 }
 0x132   :  { %v1126_v52 = vpop.f32.mrf.mxu1 }
 0x133   :  { %v448_v57 = vadd.f32 %v1155_v25, %v1126_v52  ;;  %v439_v52 = vadd.f32 %v1155_v25, %v1114_v40 }
 0x135   :  { %787 = vmatmul.msk.f32.gmra.mxu3 %vm69_vm0, %v300_v51  ;;  %v530_v1 = vmax.f32 %v439_v52, 0.0 }
 0x13a   :  { %v1130_v56 = vpop.f32.mrf.mxu1 }
 0x13b   :  { %v451_v53 = vadd.f32 %v1155_v25, %v1130_v56  ;;  %v442_v56 = vadd.f32 %v1155_v25, %v1118_v45 }
 0x13d   :  { %788 = vmatmul.msk.f32.gmra.mxu3 %vm69_vm0, %v301_v55  ;;  %v534_v58 = vmax.f32 %v451_v53, 0.0 }
 0x142   :  { %v1134_v60 = vpop.f32.mrf.mxu1 }
 0x143   :  { %v454_v50 = vadd.f32 %v1155_v25, %v1134_v60  ;;  %v533_v60 = vmax.f32 %v448_v57, 0.0 }
 0x145   :  { %789 = vmatmul.msk.f32.gmra.mxu3 %vm69_vm0, %v302_v59  ;;  %v535_v54 = vmax.f32 %v454_v50, 0.0  ;;  %v445_v59 = vadd.f32 %v1155_v25, %v1122_v48  ;;  %v436_v48 = vadd.f32 %v1155_v25, %v1110_v35 }
 0x147   :  { %v532_v62 = vmax.f32 %v445_v59, 0.0  ;;  %v529_v45 = vmax.f32 %v436_v48, 0.0 }
 0x14a   :  { %v456_v0 = vpop.f32.mrf.mxu1 }
 0x14b   :  { %v457_v46 = vadd.f32 %v1155_v25, %v456_v0 }
 0x14d   :  { %790 = vmatmul.msk.f32.gmra.mxu3 %vm69_vm0, %v303_v63  ;;  %v536_v51 = vmax.f32 %v457_v46, 0.0  ;;  %v531_v63 = vmax.f32 %v442_v56, 0.0 }
 0x152   :  { %v459_v3 = vpop.f32.mrf.mxu1 }
 0x153   :  { %v460_v43 = vadd.f32 %v1155_v25, %v459_v3 }
 0x155   :  { %791 = vmatmul.msk.f32.gmra.mxu3 %vm69_vm0, %v304_v2  ;;  %v537_v47 = vmax.f32 %v460_v43, 0.0  ;;  %v433_v2 = vadd.f32 %v1155_v25, %v1106_v30 }
 0x157   :  { %v528_v4 = vmax.f32 %v433_v2, 0.0 }
 0x15a   :  { %v462_v7 = vpop.f32.mrf.mxu1 }
 0x15b   :  { %v463_v39 = vadd.f32 %v1155_v25, %v462_v7 }
 0x15d   :  { %792 = vmatmul.msk.f32.gmra.mxu3 %vm69_vm0, %v305_v6  ;;  %v538_v44 = vmax.f32 %v463_v39, 0.0 }
 0x162   :  { %v465_v11 = vpop.f32.mrf.mxu1 }
 0x163   :  { %v466_v37 = vadd.f32 %v1155_v25, %v465_v11 }
 0x165   :  { %793 = vmatmul.msk.f32.gmra.mxu3 %vm69_vm0, %v306_v10  ;;  %v539_v41 = vmax.f32 %v466_v37, 0.0 }
 0x16a   :  { %v468_v15 = vpop.f32.mrf.mxu1 }
 0x16b   :  { %v469_v27 = vadd.f32 %v1155_v25, %v468_v15 }
 0x16d   :  { %794 = vmatmul.msk.f32.gmra.mxu3 %vm69_vm0, %v307_v14  ;;  %v540_v38 = vmax.f32 %v469_v27, 0.0  ;;  %v871_v27 = vmov 0  }
 0x16e   :  { %842 = vset.pattern.permute.xlu0 %v871_v27 }
 0x172   :  { %v471_v19 = vpop.f32.mrf.mxu1 }
 0x173   :  { %v472_v33 = vadd.f32 %v1155_v25, %v471_v19 }
 0x175   :  { %795 = vmatmul.msk.f32.gmra.mxu3 %vm69_vm0, %v308_v18  ;;  %v541_v36 = vmax.f32 %v472_v33, 0.0 }
 0x17a   :  { %v474_v22 = vpop.f32.mrf.mxu1 }
 0x17b   :  { %v475_v31 = vadd.f32 %v1155_v25, %v474_v22 }
 0x17d   :  { %796 = vmatmul.msk.f32.gmra.mxu3 %vm69_vm0, %v309_v21  ;;  %v542_v34 = vmax.f32 %v475_v31, 0.0  ;;  %v560_v31 = vld [vmem:[%s1255_s5] sm:$0x1]  ;;  %s872_s5 = smov [#allocation3]  }
 0x17e   :  { %s723_s9 = sshll.u32 %s872_s5, 4  ;;  %s724_s9 = int_to_ptr.vmem [resolvable:$true] %s723_s9 }
 0x182   :  { %v477_v28 = vpop.f32.mrf.mxu1 }
 0x183   :  { %v478_v29 = vadd.f32 %v1155_v25, %v477_v28 }
 0x185   :  { %v543_v32 = vmax.f32 %v478_v29, 0.0  ;;  %797 = vmatmul.msk.f32.gmra.mxu3 %vm69_vm0, %v310_v26 }
 0x187   :  { %798 = vmatpush.xpose.msk.msrb.mxu2 %vm69_vm0, %v543_v32 }
 0x18b   :  { %799 = vmatpush.xpose.msk.msrb.mxu2 %vm69_vm0, %v542_v34  ;;  %v561_v34 = vld [vmem:[#allocation2] sm:$0x1] }
 0x18c   :  { %564 = vperm.xlu0 %842, %v561_v34  }
 0x18f   :  { %800 = vmatpush.xpose.msk.msrb.mxu2 %vm69_vm0, %v541_v36 }
 0x193   :  { %801 = vmatpush.xpose.msk.msrb.mxu2 %vm69_vm0, %v540_v38 }
 0x197   :  { %802 = vmatpush.xpose.msk.msrb.mxu2 %vm69_vm0, %v539_v41 }
 0x198   :  { %v1169_v42 = vpop.f32.mrf.mxu3 }
 0x19b   :  { %803 = vmatpush.xpose.msk.msrb.mxu2 %vm69_vm0, %v538_v44 }
 0x19f   :  { %804 = vmatpush.xpose.msk.msrb.mxu2 %vm69_vm0, %v537_v47  ;;  %v484_v47 = vadd.f32 %v1155_v25, %v1169_v42 }
 0x1a0   :  { %v1175_v49 = vpop.f32.mrf.mxu3 }
 0x1a1   :  { %v487_v44 = vadd.f32 %v1155_v25, %v1175_v49 }
 0x1a3   :  { %805 = vmatpush.xpose.msk.msrb.mxu2 %vm69_vm0, %v536_v51  ;;  %v546_v50 = vmax.f32 %v487_v44, 0.0  ;;  %v480_v51 = vpop.f32.mrf.mxu1 }
 0x1a4   :  { %v481_v53 = vadd.f32 %v1155_v25, %v480_v51 }
 0x1a7   :  { %806 = vmatpush.xpose.msk.msrb.mxu2 %vm69_vm0, %v535_v54  ;;  %v545_v54 = vmax.f32 %v484_v47, 0.0 }
 0x1a8   :  { %v1183_v55 = vpop.f32.mrf.mxu3 }
 0x1a9   :  { %v490_v41 = vadd.f32 %v1155_v25, %v1183_v55  ;;  %v544_v55 = vmax.f32 %v481_v53, 0.0 }
 0x1ab   :  { %807 = vmatpush.xpose.msk.msrb.mxu2 %vm69_vm0, %v534_v58  ;;  %v547_v46 = vmax.f32 %v490_v41, 0.0  ;;  %v713_v58 = vlaneseq }
 0x1ad   :  { %vm715_vm2 = vcmp.lt.s32.totalorder %v713_v58, 256 }
 0x1af   :  { %808 = vmatpush.xpose.msk.msrb.mxu2 %vm69_vm0, %v533_v60 }
 0x1b0   :  { %v1191_v61 = vpop.f32.mrf.mxu3 }
 0x1b1   :  { %v493_v38 = vadd.f32 %v1155_v25, %v1191_v61 }
 0x1b3   :  { %809 = vmatpush.xpose.msk.msrb.mxu2 %vm69_vm0, %v532_v62  ;;  %v548_v43 = vmax.f32 %v493_v38, 0.0 }
 0x1b7   :  { %810 = vmatpush.xpose.msk.msrb.mxu2 %vm69_vm0, %v531_v63 }
 0x1b8   :  { %v495_v0 = vpop.f32.mrf.mxu3 }
 0x1b9   :  { %v496_v36 = vadd.f32 %v1155_v25, %v495_v0 }
 0x1bb   :  { %811 = vmatpush.xpose.msk.msrb.mxu2 %vm69_vm0, %v530_v1  ;;  %v549_v39 = vmax.f32 %v496_v36, 0.0 }
 0x1bf   :  { %812 = vmatpush.xpose.msk.msrb.mxu2 %vm69_vm0, %v529_v45 }
 0x1c0   :  { %v498_v3 = vpop.f32.mrf.mxu3 }
 0x1c1   :  { %v499_v32 = vadd.f32 %v1155_v25, %v498_v3 }
 0x1c3   :  { %813 = vmatpush.xpose.msk.msrb.mxu2 %vm69_vm0, %v528_v4  ;;  %v550_v37 = vmax.f32 %v499_v32, 0.0 }
 0x1c6   :  { %814 = vmatmul.msk.f32.vlgmr.msrb.gmra.mxu2 %vm69_vm0, %v560_v31 }
 0x1c8   :  { %v501_v40 = vpop.f32.mrf.mxu3 }
 0x1c9   :  { %v502_v28 = vadd.f32 %v1155_v25, %v501_v40 }
 0x1cb   :  { %v551_v33 = vmax.f32 %v502_v28, 0.0 }
 0x1d0   :  { %v504_v5 = vpop.f32.mrf.mxu3 }
 0x1d1   :  { %v505_v24 = vadd.f32 %v1155_v25, %v504_v5 }
 0x1d3   :  { %v552_v29 = vmax.f32 %v505_v24, 0.0 }
 0x1d8   :  { %v507_v6 = vpop.f32.mrf.mxu3 }
 0x1d9   :  { %v508_v22 = vadd.f32 %v1155_v25, %v507_v6 }
 0x1db   :  { %v553_v26 = vmax.f32 %v508_v22, 0.0 }
 0x1e0   :  { %v510_v7 = vpop.f32.mrf.mxu3 }
 0x1e1   :  { %v511_v20 = vadd.f32 %v1155_v25, %v510_v7 }
 0x1e3   :  { %v554_v23 = vmax.f32 %v511_v20, 0.0 }
 0x1e8   :  { %v513_v8 = vpop.f32.mrf.mxu3 }
 0x1e9   :  { %v514_v18 = vadd.f32 %v1155_v25, %v513_v8 }
 0x1eb   :  { %v555_v21 = vmax.f32 %v514_v18, 0.0 }
 0x1f0   :  { %v516_v9 = vpop.f32.mrf.mxu3 }
 0x1f1   :  { %v517_v16 = vadd.f32 %v1155_v25, %v516_v9 }
 0x1f3   :  { %v556_v19 = vmax.f32 %v517_v16, 0.0 }
 0x1f8   :  { %v519_v35 = vpop.f32.mrf.mxu3 }
 0x1f9   :  { %v520_v14 = vadd.f32 %v1155_v25, %v519_v35 }
 0x1fb   :  { %v557_v17 = vmax.f32 %v520_v14, 0.0 }
 0x1fe   :  { %v565_v49 = vpop.permute.xlu0 %564 }
 0x1ff   :  { %v567_v57 = vperm.slane %v565_v49, 0 }
 0x200   :  { %v522_v10 = vpop.f32.mrf.mxu3 }
 0x201   :  { %v523_v30 = vadd.f32 %v1155_v25, %v522_v10 }
 0x203   :  { %v558_v15 = vmax.f32 %v523_v30, 0.0 }
 0x208   :  { %v525_v11 = vpop.f32.mrf.mxu3 }
 0x209   :  { %v526_v12 = vadd.f32 %v1155_v25, %v525_v11 }
 0x20b   :  { %v559_v13 = vmax.f32 %v526_v12, 0.0 }
 0x20d   :  { %815 = vmatpush.xpose.msk.msrb.mxu3 %vm69_vm0, %v559_v13 }
 0x211   :  { %816 = vmatpush.xpose.msk.msrb.mxu3 %vm69_vm0, %v558_v15 }
 0x215   :  { %817 = vmatpush.xpose.msk.msrb.mxu3 %vm69_vm0, %v557_v17 }
 0x219   :  { %818 = vmatpush.xpose.msk.msrb.mxu3 %vm69_vm0, %v556_v19 }
 0x21d   :  { %819 = vmatpush.xpose.msk.msrb.mxu3 %vm69_vm0, %v555_v21 }
 0x221   :  { %820 = vmatpush.xpose.msk.msrb.mxu3 %vm69_vm0, %v554_v23 }
 0x225   :  { %821 = vmatpush.xpose.msk.msrb.mxu3 %vm69_vm0, %v553_v26 }
 0x229   :  { %822 = vmatpush.xpose.msk.msrb.mxu3 %vm69_vm0, %v552_v29 }
 0x22d   :  { %823 = vmatpush.xpose.msk.msrb.mxu3 %vm69_vm0, %v551_v33 }
 0x231   :  { %824 = vmatpush.xpose.msk.msrb.mxu3 %vm69_vm0, %v550_v37 }
 0x235   :  { %825 = vmatpush.xpose.msk.msrb.mxu3 %vm69_vm0, %v549_v39 }
 0x239   :  { %826 = vmatpush.xpose.msk.msrb.mxu3 %vm69_vm0, %v548_v43 }
 0x23d   :  { %827 = vmatpush.xpose.msk.msrb.mxu3 %vm69_vm0, %v547_v46 }
 0x241   :  { %828 = vmatpush.xpose.msk.msrb.mxu3 %vm69_vm0, %v546_v50 }
 0x245   :  { %829 = vmatpush.xpose.msk.msrb.mxu3 %vm69_vm0, %v545_v54 }
 0x249   :  { %830 = vmatpush.xpose.msk.msrb.mxu3 %vm69_vm0, %v544_v55  ;;  %v684_v60 = vpop.f32.mrf.mxu2 }
 0x24a   :  { %v685_v61 = vadd.f32 %v684_v60, %v567_v57 }
 0x24c   :  { %831 = vmatmul.msk.f32.vlgmr.msrb.gmra.mxu3 %vm69_vm0, %v560_v31 }
 0x2cf   :  { %v704_v59 = vpop.f32.mrf.mxu3 }
 0x2d0   :  { %v705_v42 = vadd.f32 %v704_v59, %v567_v57 }
 0x2d2   :  { %v709_v25 = vrot.slane %v705_v42, 7 }
 0x2d4   :  { %v711_v56 = vsel %vm710_vm1, %v685_v61, %v709_v25 }
 0x2d5   :  { %717 = vst.msk [vmem:[#allocation3] sm:$0x3] %vm715_vm2, %v711_v56 }
 0x2d6   :  { %728 = dma.vmem_to_hbm [thread:$0]  %s724_s9, 32, %s726_s10, [#allocation4]  }
 0x2d7   :  { %869 = dma.done.wait [#allocation4], 32  }
 0x2d8   :  { %870 = vsyncadd [#allocation4], 4294967264 }
 0x2d9   :  { %733 = vsyncpa [#allocation4], 1 }

</bundles_post_ra>
